<compile_context>
chip_gen: v5e
topology: v5e:2x2
jax: 0.10.0
libtpu: 0.0.40
codegen_flags: <defaults>
</compile_context>

<pallas_src>
import jax
import jax.numpy as jnp
from jax.experimental import pallas as pl
from jax.experimental.pallas import tpu as pltpu


def _round_up(x, m):
    return ((x + m - 1) // m) * m


def _vmem_budget_bytes():
    """Per-generation scoped-VMEM budget: ~5/8 of physical, capped at 64 MiB.

    v5e/v6e (128 MiB physical) -> 64 MiB; v7x (64 MiB physical) -> 40 MiB.
    """
    try:
        cap = int(pltpu.get_tpu_info().vmem_capacity_bytes)
    except Exception:
        cap = 64 * 1024 * 1024  # conservative: assume v7x-sized VMEM
    return max(16 * 1024 * 1024, min(cap * 5 // 8, 64 * 1024 * 1024))


def _pw_kernel(x_ref, w_ref, brow_ref, o_ref):
    # x_ref:    (TB, IN)   input row tile, native dtype (cast in-kernel for the MXU)
    # w_ref:    (IN, OUT)  pre-transposed weight (resident, compute dtype)
    # brow_ref: (1, OUT)   folded whitening bias row (f32)
    # o_ref:    (TB, OUT)
    x = x_ref[...].astype(w_ref.dtype)                                      # VPU (hidden under DMA)
    acc = jnp.dot(x, w_ref[...], preferred_element_type=jnp.float32)        # MXU, f32 accumulate
    o_ref[...] = (acc - brow_ref[...]).astype(o_ref.dtype)                  # small OUT-wide subtract


def prepare_pw_params(bias, weight, compute_dtype=jnp.float32):
    """One-time parameter preparation (at load/init time, not per call).

    bias:   [IN]        whitening bias (PyTorch PWLayer.bias)
    weight: [OUT, IN]   nn.Linear weight (PyTorch convention)

    Returns (w_t [IN, OUT] in compute_dtype, bias_row [1, OUT] in f32).
    """
    OUT, IN = weight.shape
    w_t = weight.astype(jnp.float32).T                       # [IN, OUT]
    # Fold bias:  (x - b) @ W.T = x @ W.T - (b @ W.T).  Keep the folded row in f32.
    bias_row = (bias.astype(jnp.float32) @ w_t).reshape(1, OUT)
    return w_t.astype(compute_dtype), bias_row


def pw_layer(x, w_t, bias_row, *, tile_b=None):
    """x: [B, IN]; w_t: [IN, OUT]; bias_row: [1, OUT] (from prepare_pw_params)."""
    B, IN = x.shape
    IN_w, OUT = w_t.shape
    assert IN_w == IN, "weight / input feature-size mismatch"

    compute_dtype = w_t.dtype
    out_dtype = x.dtype
    x_bytes = jnp.dtype(x.dtype).itemsize
    w_bytes = jnp.dtype(compute_dtype).itemsize
    out_bytes = jnp.dtype(out_dtype).itemsize

    # bf16 packs two rows per sublane -> keep row tiles 16-granular in that case.
    is_bf16 = (jnp.dtype(compute_dtype) == jnp.dtype(jnp.bfloat16)
               or jnp.dtype(out_dtype) == jnp.dtype(jnp.bfloat16))
    gran = 16 if is_bf16 else 8

    budget = _vmem_budget_bytes()

    # ---- pick the largest batch tile that fits the per-generation VMEM budget ----
    if tile_b is None:
        resident = IN * OUT * w_bytes + OUT * 4              # single-buffered residents
        tile_b = gran
        for cand in (2048, 1024, 512, 256, 128, 64, 32, 16, 8):
            need = resident + 2 * cand * IN * x_bytes + 2 * cand * OUT * out_bytes
            if need <= budget:
                tile_b = cand
                break
    # Don't over-tile tiny batches ...
    tile_b = min(tile_b, _round_up(B, gran))
    # ... and make sure a >=2-tile grid exists where possible so the "parallel"
    # grid axis can feed both TensorCores on v7x.
    if pl.cdiv(B, tile_b) < 2 and tile_b > gran:
        tile_b = max(gran, _round_up(tile_b // 2, gran))
    tile_b = max(gran, (tile_b // gran) * gran)

    grid = (pl.cdiv(B, tile_b),)

    flops = 2 * B * IN * OUT
    bytes_accessed = (B * IN * x_bytes          # x (streamed once)
                      + IN * OUT * w_bytes      # weight (read once, resident)
                      + OUT * 4                 # folded bias
                      + B * OUT * out_bytes)    # output (no padding, no slice pass)

    def _run(single_buffer_resident):
        res_kwargs = dict(pipeline_mode=pl.Buffered(1)) if single_buffer_resident else {}
        w_spec = pl.BlockSpec((IN, OUT), lambda i: (0, 0), **res_kwargs)
        b_spec = pl.BlockSpec((1, OUT), lambda i: (0, 0), **res_kwargs)
        return pl.pallas_call(
            _pw_kernel,
            out_shape=jax.ShapeDtypeStruct((B, OUT), out_dtype),
            grid_spec=pltpu.PrefetchScalarGridSpec(
                num_scalar_prefetch=0,
                grid=grid,
                in_specs=[
                    pl.BlockSpec((tile_b, IN), lambda i: (i, 0)),   # x row tile (pipelined)
                    w_spec,                                         # weight (resident)
                    b_spec,                                         # folded bias (resident)
                ],
                out_specs=pl.BlockSpec((tile_b, OUT), lambda i: (i, 0)),
            ),
            compiler_params=pltpu.CompilerParams(
                dimension_semantics=("parallel",),   # batch axis shards across TCs (v7x)
                vmem_limit_bytes=int(budget),
            ),
            cost_estimate=pl.CostEstimate(
                flops=int(flops), transcendentals=0, bytes_accessed=int(bytes_accessed)),
        )(x, w_t, bias_row)

    try:
        return _run(True)
    except Exception:
        # Fallback: let Pallas double-buffer the (small) resident operands.
        return _run(False)


if __name__ == "__main__":
    key = jax.random.PRNGKey(0)
    kx, kw, kb, kx2 = jax.random.split(key, 4)

    input_size, output_size = 64, 32

    # Parameters (bias init is zeros in PWLayer; use a nonzero "trained" bias here to
    # actually exercise the whitening subtract / bias-folding path).
    weight = 0.02 * jax.random.normal(kw, (output_size, input_size), dtype=jnp.float32)
    bias = 0.1 * jax.random.normal(kb, (input_size,), dtype=jnp.float32)

    def ref_fn(x):
        return (x - bias[None, :]) @ weight.T        # PyTorch forward, dropout p=0

    ok = True

    # --- f32 path, non-divisible batch (exercises the masked ragged-edge block) ---
    x1 = jax.random.normal(kx, (13, input_size), dtype=jnp.float32)
    w_t32, brow32 = prepare_pw_params(bias, weight, compute_dtype=jnp.float32)
    out1 = pw_layer(x1, w_t32, brow32)
    jax.block_until_ready(out1)
    ok &= out1.shape == (13, output_size)
    ok &= bool(jnp.allclose(out1, ref_fn(x1), atol=1e-4, rtol=1e-4))

    # --- bf16 MXU path (f32 accumulate, in-kernel cast of the streamed f32 x) ---
    x2 = jax.random.normal(kx2, (16, input_size), dtype=jnp.float32)
    w_t16, brow16 = prepare_pw_params(bias, weight, compute_dtype=jnp.bfloat16)
    out2 = pw_layer(x2, w_t16, brow16)
    jax.block_until_ready(out2)
    ok &= out2.shape == (16, output_size)
    ok &= bool(jnp.allclose(out2, ref_fn(x2), atol=2e-2, rtol=2e-2))

    assert ok, "PWLayer Pallas kernel mismatch vs reference"
    print("KERNEL_OK")
</pallas_src>

<mosaic_0001>
module attributes {stable_mosaic.version = 11 : i64} {
  func.func @_pw_kernel(%arg0: i32, %arg1: memref<8x64xf32, #tpu.memory_space<vmem>>, %arg2: memref<64x32xf32, #tpu.memory_space<vmem>>, %arg3: memref<1x32xf32, #tpu.memory_space<vmem>>, %arg4: memref<8x32xf32, #tpu.memory_space<vmem>>) attributes {dimension_semantics = [#tpu.dimension_semantics<parallel>], iteration_bounds = array<i64: 2>, scalar_prefetch = 0 : i64, scratch_operands = 0 : i64, tpu.core_type = #tpu.core_type<tc>, window_params = [{transform_indices = @transform_0, window_bounds = array<i64: 8, 64>}, {pipeline_mode = #tpu.pipeline_mode<synchronous>, transform_indices = @transform_1, window_bounds = array<i64: 64, 32>}, {pipeline_mode = #tpu.pipeline_mode<synchronous>, transform_indices = @transform_2, window_bounds = array<i64: 1, 32>}, {transform_indices = @transform_3, window_bounds = array<i64: 8, 32>}]} {
    %c0 = arith.constant 0 : index
    %c0_0 = arith.constant 0 : index
    %0 = vector.load %arg1[%c0, %c0_0] : memref<8x64xf32, #tpu.memory_space<vmem>>, vector<8x64xf32>
    %c0_1 = arith.constant 0 : index
    %c0_2 = arith.constant 0 : index
    %1 = vector.load %arg2[%c0_1, %c0_2] : memref<64x32xf32, #tpu.memory_space<vmem>>, vector<64x32xf32>
    %cst = arith.constant dense<0.000000e+00> : vector<8x32xf32>
    %2 = tpu.matmul %0, %1, %cst {dimension_numbers = #tpu.dot_dimension_numbers<[1], [0], [0], [1], [0, 0, 1, 1], [], []>} : vector<8x64xf32>, vector<64x32xf32>, vector<8x32xf32> -> vector<8x32xf32>
    %c0_3 = arith.constant 0 : index
    %c0_4 = arith.constant 0 : index
    %3 = vector.load %arg3[%c0_3, %c0_4] : memref<1x32xf32, #tpu.memory_space<vmem>>, vector<1x32xf32>
    %4 = vector.broadcast %3 : vector<1x32xf32> to vector<8x32xf32>
    %5 = arith.subf %2, %4 : vector<8x32xf32>
    %c0_5 = arith.constant 0 : index
    %c0_6 = arith.constant 0 : index
    %6 = vector.load %arg4[%c0_5, %c0_6] : memref<8x32xf32, #tpu.memory_space<vmem>>, vector<8x32xf32>
    tpu.vector_store %arg4[%c0_5, %c0_6], %5 {strides = array<i32>} : memref<8x32xf32, #tpu.memory_space<vmem>>, vector<8x32xf32>,
    return
  }
  func.func @transform_0(%arg0: i32) -> (i32, i32) {
    %c0_i32 = arith.constant 0 : i32
    %c0_i32_0 = arith.constant 0 : i32
    return %arg0, %c0_i32 : i32, i32
  }
  func.func @transform_1(%arg0: i32) -> (i32, i32) {
    %c0_i32 = arith.constant 0 : i32
    %c0_i32_0 = arith.constant 0 : i32
    %c0_i32_1 = arith.constant 0 : i32
    return %c0_i32, %c0_i32_0 : i32, i32
  }
  func.func @transform_2(%arg0: i32) -> (i32, i32) {
    %c0_i32 = arith.constant 0 : i32
    %c0_i32_0 = arith.constant 0 : i32
    %c0_i32_1 = arith.constant 0 : i32
    return %c0_i32, %c0_i32_0 : i32, i32
  }
  func.func @transform_3(%arg0: i32) -> (i32, i32) {
    %c0_i32 = arith.constant 0 : i32
    %c0_i32_0 = arith.constant 0 : i32
    return %arg0, %c0_i32 : i32, i32
  }
}

module attributes {stable_mosaic.version = 11 : i64} {
  func.func @_pw_kernel(%arg0: i32, %arg1: memref<8x64xf32, #tpu.memory_space<vmem>>, %arg2: memref<64x32xf32, #tpu.memory_space<vmem>>, %arg3: memref<1x32xf32, #tpu.memory_space<vmem>>, %arg4: memref<8x32xf32, #tpu.memory_space<vmem>>) attributes {dimension_semantics = [#tpu.dimension_semantics<parallel>], iteration_bounds = array<i64: 2>, scalar_prefetch = 0 : i64, scratch_operands = 0 : i64, tpu.core_type = #tpu.core_type<tc>, window_params = [{transform_indices = @transform_0, window_bounds = array<i64: 8, 64>}, {pipeline_mode = #tpu.pipeline_mode<synchronous>, transform_indices = @transform_1, window_bounds = array<i64: 64, 32>}, {pipeline_mode = #tpu.pipeline_mode<synchronous>, transform_indices = @transform_2, window_bounds = array<i64: 1, 32>}, {transform_indices = @transform_3, window_bounds = array<i64: 8, 32>}]} {
    %c0 = arith.constant 0 : index
    %c0_0 = arith.constant 0 : index
    %0 = vector.load %arg1[%c0, %c0_0] : memref<8x64xf32, #tpu.memory_space<vmem>>, vector<8x64xf32>
    %c0_1 = arith.constant 0 : index
    %c0_2 = arith.constant 0 : index
    %1 = vector.load %arg2[%c0_1, %c0_2] : memref<64x32xf32, #tpu.memory_space<vmem>>, vector<64x32xf32>
    %cst = arith.constant dense<0.000000e+00> : vector<8x32xf32>
    %2 = tpu.matmul %0, %1, %cst {dimension_numbers = #tpu.dot_dimension_numbers<[1], [0], [0], [1], [0, 0, 1, 1], [], []>} : vector<8x64xf32>, vector<64x32xf32>, vector<8x32xf32> -> vector<8x32xf32>
    %c0_3 = arith.constant 0 : index
    %c0_4 = arith.constant 0 : index
    %3 = vector.load %arg3[%c0_3, %c0_4] : memref<1x32xf32, #tpu.memory_space<vmem>>, vector<1x32xf32>
    %4 = vector.broadcast %3 : vector<1x32xf32> to vector<8x32xf32>
    %5 = arith.subf %2, %4 : vector<8x32xf32>
    %c0_5 = arith.constant 0 : index
    %c0_6 = arith.constant 0 : index
    %6 = vector.load %arg4[%c0_5, %c0_6] : memref<8x32xf32, #tpu.memory_space<vmem>>, vector<8x32xf32>
    tpu.vector_store %arg4[%c0_5, %c0_6], %5 {strides = array<i32>} : memref<8x32xf32, #tpu.memory_space<vmem>>, vector<8x32xf32>,
    return
  }
  func.func @transform_0(%arg0: i32) -> (i32, i32) {
    %c0_i32 = arith.constant 0 : i32
    %c0_i32_0 = arith.constant 0 : i32
    return %arg0, %c0_i32 : i32, i32
  }
  func.func @transform_1(%arg0: i32) -> (i32, i32) {
    %c0_i32 = arith.constant 0 : i32
    %c0_i32_0 = arith.constant 0 : i32
    %c0_i32_1 = arith.constant 0 : i32
    return %c0_i32, %c0_i32_0 : i32, i32
  }
  func.func @transform_2(%arg0: i32) -> (i32, i32) {
    %c0_i32 = arith.constant 0 : i32
    %c0_i32_0 = arith.constant 0 : i32
    %c0_i32_1 = arith.constant 0 : i32
    return %c0_i32, %c0_i32_0 : i32, i32
  }
  func.func @transform_3(%arg0: i32) -> (i32, i32) {
    %c0_i32 = arith.constant 0 : i32
    %c0_i32_0 = arith.constant 0 : i32
    return %arg0, %c0_i32 : i32, i32
  }
}

</mosaic_0001>

<bundles_post_ra>
// kernel: tpu_custom_call.1
= control target key start
LH: loop header
LB: loop body
LE: loop exit
PB: predicated region body
PF: predicated region fallthrough
CT: control target
= control target key end

     0   :  { %8 = vsyncpa [#allocation3], 0  ;;  %s528_s0 = inlined_call_operand.vmem [shape: f32[13,64], index: 0, kind: input, shape index: {}]   ;;  %s529_s1 = inlined_call_operand.vmem [shape: f32[64,32], index: 1, kind: input, shape index: {}]   ;;  %s530_s2 = inlined_call_operand.vmem [shape: f32[1,32], index: 2, kind: input, shape index: {}]   ;;  %s531_s3 = inlined_call_operand.hbm [shape: f32[13,32], index: 3, kind: output, shape index: {}]  }
   0x1   :  { %10 = vsyncpa [#allocation3 + $0x1], 0  ;;  %s416_s12 = smov 0   ;;  %s418_s13 = smov 0  }
   0x2   :  { %s420_s14 = smov 0   ;;  %s422_s15 = smov 0  }
   0x3 LB: > { %s437_s16 = sadd.s32 4294967295, %s394_s15   ;;  %s281_s17 = sadd.s32 4294967294, %s394_s15   ;;  %s394_s15 = sphi %s422_s15, %s537_s15   ;;  %s390_s14 = sphi %s420_s14, %s536_s14   ;;  %s386_s13 = sphi %s418_s13, %s535_s13   ;;  %s382_s12 = sphi %s416_s12, %s534_s12  }
   0x4   : > { %s441_s18 = sadd.s32 1, %s394_s15   ;;  %s91_s19 = sadd.s32 1, %s390_s14 }
   0x5   : > { %s88_s20 = ssub.s32 %s394_s15, %s441_s18  ;;  %p101_p0 = scmp.ne.s32.totalorder %s390_s14, %s386_s13 }
   0x6   : > { %p89_p1 = scmp.eq.s32.totalorder %s88_s20, 0  ;;  %p102_p2 = scmp.eq.s32.totalorder %s437_s16, 1 }
   0x7   : > { %p107_p3 = scmp.ne.s32.totalorder %s386_s13, %s382_s12  ;;  %p108_p4 = scmp.eq.s32.totalorder %s281_s17, 1 }
   0x8   : > { %s452_s21 = scalar_select %p89_p1, %s390_s14, %s91_s19  }
   0x9   : > { %p454_p5 = por %p102_p2, %p101_p0  ;;  %p458_p6 = por %p108_p4, %p107_p3 }
   0xa   : > { %p284_p7 = scmp.ge.s32.totalorder %s394_s15, 1  ;;  %p139_p8 = scmp.lt.s32.totalorder %s394_s15, 3 }
   0xc   : > { %p140_p9 = pnand %p284_p7, %p139_p8 }
   0xd   : > { %p162_p10 = scmp.lt.s32.totalorder (!%p140_p9), %s437_s16, 1  ;;  %s159_s27 = sand.u32 (!%p140_p9), 1, %s386_s13  }
   0xe   : > { %143 = sbr.rel (%p140_p9) target bundleno = 166 (0xa6), region = 32  ;;  %s285_s28 = sshll.u32 (!%p140_p9), %s159_s27, 3 }
   0xf   : > { %s289_s29 = sshll.u32 (!%p140_p9), %s437_s16, 3  ;;  %s207_s11 = scalar_lea.sflag (!%p140_p9), [#allocation3], %s159_s27 }
  0x10   : > { %s217_s5 = scalar_lea.hbm (!%p140_p9), %s531_s3, %s289_s29 }
  0x11   : > { %s221_s10 = sshll.u32 (!%p140_p9), %s217_s5, 4  ;;  %s222_s10 = int_to_ptr.hbm [resolvable:$true] %s221_s10 }
  0x13   : > { %v174_v0 = vld [vmem:[%s529_s1 + $0x38] sm:$0xff]  ;;  %v173_v1 = vld [vmem:[%s529_s1 + $0x30] sm:$0xff]  ;;  %v172_v2 = vld [vmem:[%s529_s1 + $0x28] sm:$0xff]  ;;  %s163_s30 = scalar_select %p162_p10, %s437_s16, 1  ;;  %vm175_vm0 = vcmask 523264   ;;  %vm204_vm1 = vcmask 261120  }
  0x14   : > { %187 = vmatpush.msra.mxu0 %v174_v0  ;;  %v171_v3 = vld [vmem:[%s529_s1 + $0x20] sm:$0xff]  ;;  %v170_v4 = vld [vmem:[%s529_s1 + $0x18] sm:$0xff]  ;;  %v169_v5 = vld [vmem:[%s529_s1 + $0x10] sm:$0xff]  ;;  %s346_s16 = sshra.s32 %s222_s10, 4  ;;  %s347_s16 = int_to_ptr.hbm [resolvable:$true] %s346_s16 }
  0x15   : > { %s286_s8 = sshll.u32 %s163_s30, 3  ;;  %v168_v6 = vld [vmem:[%s529_s1 + $0x8] sm:$0xff]  ;;  %v167_v7 = vld [vmem:[%s529_s1] sm:$0xff]  ;;  %s348_s17 = scalar_lea.hbm %s347_s16, 8 }
  0x16   : > { %188 = vmatpush.msra.mxu0 %v173_v1  ;;  %s165_s24 = scalar_lea.vmem %s528_s0, %s286_s8  ;;  %v331_v9 = vld [vmem:[%s530_s2] ss:$0 sm:$0xff]  ;;  %s161_s8 = scalar_lea.vmem [#allocation2], %s285_s28 }
  0x17   : > { %v166_v8 = vld [vmem:[%s165_s24] sm:$0xff]  ;;  %s219_s9 = sshll.u32 %s161_s8, 4  ;;  %p349_p11 = scmp.ne.s32.totalorder %s347_s16, %s348_s17  ;;  %s220_s9 = int_to_ptr.vmem [resolvable:$true] %s219_s9 }
  0x18   : > { %189 = vmatpush.msra.mxu0 %v172_v2  ;;  %s352_s24 = scalar_lea.hbm %s531_s3, 16  ;;  %p353_p0 = scmp.lt.s32.totalorder %s347_s16, %s531_s3 }
  0x19   : > { %p350_p12 = pnand %p349_p11, %p454_p5  ;;  %p354_p1 = scmp.lt.s32.totalorder %s352_s24, %s348_s17 }
  0x1a   : > { %190 = vmatpush.msra.mxu0 %v171_v3 }
  0x1b   : > { %p351_p13 = pneg %p350_p12  ;;  %p355_p2 = por %p354_p1, %p353_p0 }
  0x1c   : > { %191 = vmatpush.msra.mxu0 %v170_v4 }
  0x1d   : > { %p356_p3 = pnand %p355_p2, %p351_p13 }
  0x1e   : > { %192 = vmatpush.msra.mxu0 %v169_v5 }
  0x20   : > { %193 = vmatpush.msra.mxu0 %v168_v6 }
  0x22   : > { %194 = vmatpush.msra.mxu0 %v167_v7 }
  0x23   : > { %287 = vmatmul.msk.f32.vlgmr.msra.gmra.mxu0 %vm175_vm0, %v166_v8 }
  0xa0   : > { %v196_v10 = vpop.f32.mrf.mxu0 }
  0xa1   : > { %v203_v11 = vsub.f32 %v196_v10, %v331_v9 }
  0xa3   : > { %205 = vst.msk [vmem:[%s161_s8] sm:$0xff] %vm204_vm1, %v203_v11 }
  0xa4   : > { %359 = shalt.err (!%p356_p3)
}
  0xa5   : > { %292 = dma.vmem_to_hbm [thread:$0]  (%p454_p5), %s220_s9, 128, %s222_s10, %s207_s11  }
  0xa6 PF: > { %p298_p4 = scmp.ge.s32.totalorder %s394_s15, 2  ;;  %s233_s27 = sand.u32 1, %s382_s12  }
  0xa7   : > { %s234_s28 = scalar_lea.sflag [#allocation3], %s233_s27 }
  0xa8   : > { %p295_p7 = pnand %p298_p4, %p458_p6 }
  0xaa   : > { %p296_p8 = pneg %p295_p7 }
  0xac   : > { %377 = dma.done.wait (%p296_p8), %s234_s28, 128  }
  0xad   : > { %379 = vsyncadd (%p296_p8), %s234_s28, 4294967168  ;;  %p13_p9 = scmp.ge.s32.totalorder %s441_s18, 4   ;;  %s534_s12 = smov %s386_s13 }
  0xae   : > { %s535_s13 = smov %s390_s14  ;;  %s536_s14 = smov %s452_s21 }
  0xaf   : > { %s537_s15 = smov %s441_s18  ;;  %15 = sbr.rel (!%p13_p9) target bundleno = 3 (0x3), region = 67 }
  0xb4   :  { %240 = vsyncpa [#allocation3], 1 }
  0xb5   :  { %242 = vsyncpa [#allocation3 + $0x1], 1 }

// kernel: tpu_custom_call.1
= control target key start
LH: loop header
LB: loop body
LE: loop exit
PB: predicated region body
PF: predicated region fallthrough
CT: control target
= control target key end

     0   :  { %8 = vsyncpa [#allocation3], 0  ;;  %s528_s0 = inlined_call_operand.vmem [shape: f32[13,64], index: 0, kind: input, shape index: {}]   ;;  %s529_s1 = inlined_call_operand.vmem [shape: f32[64,32], index: 1, kind: input, shape index: {}]   ;;  %s530_s2 = inlined_call_operand.vmem [shape: f32[1,32], index: 2, kind: input, shape index: {}]   ;;  %s531_s3 = inlined_call_operand.hbm [shape: f32[13,32], index: 3, kind: output, shape index: {}]  }
   0x1   :  { %10 = vsyncpa [#allocation3 + $0x1], 0  ;;  %s416_s12 = smov 0   ;;  %s418_s13 = smov 0  }
   0x2   :  { %s420_s14 = smov 0   ;;  %s422_s15 = smov 0  }
   0x3 LB: > { %s437_s16 = sadd.s32 4294967295, %s394_s15   ;;  %s281_s17 = sadd.s32 4294967294, %s394_s15   ;;  %s394_s15 = sphi %s422_s15, %s537_s15   ;;  %s390_s14 = sphi %s420_s14, %s536_s14   ;;  %s386_s13 = sphi %s418_s13, %s535_s13   ;;  %s382_s12 = sphi %s416_s12, %s534_s12  }
   0x4   : > { %s441_s18 = sadd.s32 1, %s394_s15   ;;  %s91_s19 = sadd.s32 1, %s390_s14 }
   0x5   : > { %s88_s20 = ssub.s32 %s394_s15, %s441_s18  ;;  %p101_p0 = scmp.ne.s32.totalorder %s390_s14, %s386_s13 }
   0x6   : > { %p89_p1 = scmp.eq.s32.totalorder %s88_s20, 0  ;;  %p102_p2 = scmp.eq.s32.totalorder %s437_s16, 1 }
   0x7   : > { %p107_p3 = scmp.ne.s32.totalorder %s386_s13, %s382_s12  ;;  %p108_p4 = scmp.eq.s32.totalorder %s281_s17, 1 }
   0x8   : > { %s452_s21 = scalar_select %p89_p1, %s390_s14, %s91_s19  }
   0x9   : > { %p454_p5 = por %p102_p2, %p101_p0  ;;  %p458_p6 = por %p108_p4, %p107_p3 }
   0xa   : > { %p284_p7 = scmp.ge.s32.totalorder %s394_s15, 1  ;;  %p139_p8 = scmp.lt.s32.totalorder %s394_s15, 3 }
   0xc   : > { %p140_p9 = pnand %p284_p7, %p139_p8 }
   0xd   : > { %p162_p10 = scmp.lt.s32.totalorder (!%p140_p9), %s437_s16, 1  ;;  %s159_s27 = sand.u32 (!%p140_p9), 1, %s386_s13  }
   0xe   : > { %143 = sbr.rel (%p140_p9) target bundleno = 166 (0xa6), region = 32  ;;  %s285_s28 = sshll.u32 (!%p140_p9), %s159_s27, 3 }
   0xf   : > { %s289_s29 = sshll.u32 (!%p140_p9), %s437_s16, 3  ;;  %s207_s11 = scalar_lea.sflag (!%p140_p9), [#allocation3], %s159_s27 }
  0x10   : > { %s217_s5 = scalar_lea.hbm (!%p140_p9), %s531_s3, %s289_s29 }
  0x11   : > { %s221_s10 = sshll.u32 (!%p140_p9), %s217_s5, 4  ;;  %s222_s10 = int_to_ptr.hbm [resolvable:$true] %s221_s10 }
  0x13   : > { %v174_v0 = vld [vmem:[%s529_s1 + $0x38] sm:$0xff]  ;;  %v173_v1 = vld [vmem:[%s529_s1 + $0x30] sm:$0xff]  ;;  %v172_v2 = vld [vmem:[%s529_s1 + $0x28] sm:$0xff]  ;;  %s163_s30 = scalar_select %p162_p10, %s437_s16, 1  ;;  %vm175_vm0 = vcmask 523264   ;;  %vm204_vm1 = vcmask 261120  }
  0x14   : > { %187 = vmatpush.msra.mxu0 %v174_v0  ;;  %v171_v3 = vld [vmem:[%s529_s1 + $0x20] sm:$0xff]  ;;  %v170_v4 = vld [vmem:[%s529_s1 + $0x18] sm:$0xff]  ;;  %v169_v5 = vld [vmem:[%s529_s1 + $0x10] sm:$0xff]  ;;  %s346_s16 = sshra.s32 %s222_s10, 4  ;;  %s347_s16 = int_to_ptr.hbm [resolvable:$true] %s346_s16 }
  0x15   : > { %s286_s8 = sshll.u32 %s163_s30, 3  ;;  %v168_v6 = vld [vmem:[%s529_s1 + $0x8] sm:$0xff]  ;;  %v167_v7 = vld [vmem:[%s529_s1] sm:$0xff]  ;;  %s348_s17 = scalar_lea.hbm %s347_s16, 8 }
  0x16   : > { %188 = vmatpush.msra.mxu0 %v173_v1  ;;  %s165_s24 = scalar_lea.vmem %s528_s0, %s286_s8  ;;  %v331_v9 = vld [vmem:[%s530_s2] ss:$0 sm:$0xff]  ;;  %s161_s8 = scalar_lea.vmem [#allocation2], %s285_s28 }
  0x17   : > { %v166_v8 = vld [vmem:[%s165_s24] sm:$0xff]  ;;  %s219_s9 = sshll.u32 %s161_s8, 4  ;;  %p349_p11 = scmp.ne.s32.totalorder %s347_s16, %s348_s17  ;;  %s220_s9 = int_to_ptr.vmem [resolvable:$true] %s219_s9 }
  0x18   : > { %189 = vmatpush.msra.mxu0 %v172_v2  ;;  %s352_s24 = scalar_lea.hbm %s531_s3, 16  ;;  %p353_p0 = scmp.lt.s32.totalorder %s347_s16, %s531_s3 }
  0x19   : > { %p350_p12 = pnand %p349_p11, %p454_p5  ;;  %p354_p1 = scmp.lt.s32.totalorder %s352_s24, %s348_s17 }
  0x1a   : > { %190 = vmatpush.msra.mxu0 %v171_v3 }
  0x1b   : > { %p351_p13 = pneg %p350_p12  ;;  %p355_p2 = por %p354_p1, %p353_p0 }
  0x1c   : > { %191 = vmatpush.msra.mxu0 %v170_v4 }
  0x1d   : > { %p356_p3 = pnand %p355_p2, %p351_p13 }
  0x1e   : > { %192 = vmatpush.msra.mxu0 %v169_v5 }
  0x20   : > { %193 = vmatpush.msra.mxu0 %v168_v6 }
  0x22   : > { %194 = vmatpush.msra.mxu0 %v167_v7 }
  0x23   : > { %287 = vmatmul.msk.f32.vlgmr.msra.gmra.mxu0 %vm175_vm0, %v166_v8 }
  0xa0   : > { %v196_v10 = vpop.f32.mrf.mxu0 }
  0xa1   : > { %v203_v11 = vsub.f32 %v196_v10, %v331_v9 }
  0xa3   : > { %205 = vst.msk [vmem:[%s161_s8] sm:$0xff] %vm204_vm1, %v203_v11 }
  0xa4   : > { %359 = shalt.err (!%p356_p3)
}
  0xa5   : > { %292 = dma.vmem_to_hbm [thread:$0]  (%p454_p5), %s220_s9, 128, %s222_s10, %s207_s11  }
  0xa6 PF: > { %p298_p4 = scmp.ge.s32.totalorder %s394_s15, 2  ;;  %s233_s27 = sand.u32 1, %s382_s12  }
  0xa7   : > { %s234_s28 = scalar_lea.sflag [#allocation3], %s233_s27 }
  0xa8   : > { %p295_p7 = pnand %p298_p4, %p458_p6 }
  0xaa   : > { %p296_p8 = pneg %p295_p7 }
  0xac   : > { %377 = dma.done.wait (%p296_p8), %s234_s28, 128  }
  0xad   : > { %379 = vsyncadd (%p296_p8), %s234_s28, 4294967168  ;;  %p13_p9 = scmp.ge.s32.totalorder %s441_s18, 4   ;;  %s534_s12 = smov %s386_s13 }
  0xae   : > { %s535_s13 = smov %s390_s14  ;;  %s536_s14 = smov %s452_s21 }
  0xaf   : > { %s537_s15 = smov %s441_s18  ;;  %15 = sbr.rel (!%p13_p9) target bundleno = 3 (0x3), region = 67 }
  0xb4   :  { %240 = vsyncpa [#allocation3], 1 }
  0xb5   :  { %242 = vsyncpa [#allocation3 + $0x1], 1 }

</bundles_post_ra>
